<compile_context>
chip_gen: v7x
topology: tpu7x:2x2x1
jax: 0.10.0
libtpu: 0.0.40
codegen_flags: <defaults>
</compile_context>

<pallas_src>
import functools
import math

import jax
import jax.numpy as jnp
from jax.experimental import pallas as pl
from jax.experimental.pallas import tpu as pltpu

_LANES = 128
_SUBLANES = 8
_MAX_BLOCK_ROWS = 4096                 # 4096 * 128 * f32 = 2 MiB per pipeline buffer
_VMEM_LIMIT_BYTES = 48 * 1024 * 1024   # > v5e's 16 MiB default, < v7x's 64 MiB physical


def _round_up(a, b):
    return pl.cdiv(a, b) * b


def _num_tensorcores():
    """2 on chips with two TensorCores per chip (v7x / megacore), else 1."""
    try:
        kind = jax.devices()[0].device_kind.lower()
    except Exception:
        return 1
    if "7x" in kind or "v7" in kind or "v4" in kind or "v5p" in kind:
        return 2
    return 1


def _int_pow(base, g):
    out = base
    for _ in range(g - 1):
        out = out * base
    return out


def _focal_elementwise(x_raw, t_raw, *, a0, a1, gamma, logits):
    """Per-element focal loss in f32.  Assumes binary targets in {0, 1}
    (the PyTorch module's alpha[targets] indexing requires the same)."""
    x = x_raw.astype(jnp.float32)
    t_f = t_raw.astype(jnp.float32)
    if jnp.issubdtype(t_raw.dtype, jnp.floating):
        t_pos = t_raw > 0.5
    else:
        t_pos = t_raw != 0                                        # cheap int compare

    if logits:
        pos = x >= 0.0                                            # reused compare
        z = jnp.exp(-jnp.abs(x))                                  # EUP exp (shared)
        bce = jnp.where(pos, x, 0.0) - x * t_f + jnp.log1p(z)     # EUP log
        # exp(-bce) = num / (1 + z) with num in {1, z} for binary targets, so
        # 1 - p_t = other / (1 + z) with `other` the complementary select — no
        # third exp, no cancellation, p_t never materialized.
        inv = 1.0 / (1.0 + z)                       # exact divide (keeps 1e-5 rtol)
        one_m_pt = jnp.where(jnp.logical_xor(pos, t_pos), 1.0, z) * inv
    else:
        # PyTorch's binary_cross_entropy clamps each log term at -100.
        log_x = jnp.maximum(jnp.log(x), -100.0)
        log_1mx = jnp.maximum(jnp.log1p(-x), -100.0)
        bce = -(t_f * log_x + (1.0 - t_f) * log_1mx)
        # exp(-bce) == max(where(t, x, 1-x), exp(-100)) for binary targets given
        # the clamp above — removes one EUP exp per element.
        p_t = jnp.maximum(jnp.where(t_pos, x, 1.0 - x), math.exp(-100.0))
        one_m_pt = 1.0 - p_t

    alpha_t = a0 + (a1 - a0) * t_f                  # == alpha[targets] for binary t
    if float(gamma) == int(gamma):
        g = int(gamma)
        mod = jnp.ones_like(one_m_pt) if g == 0 else _int_pow(one_m_pt, g)
    else:
        # TODO(synk): non-integer gamma falls back to pow (exp+log on the EUP).
        mod = one_m_pt ** gamma
    return alpha_t * mod * bce


def _focal_sum_kernel(x_ref, t_ref, out_ref, acc_ref, *, a0, a1, gamma, logits,
                      rows_valid, block_rows, inner, ragged):
    """Streaming sum into an (8,128) VMEM accumulator; one vreg epilogue."""
    i = pl.program_id(1)

    @pl.when(i == 0)
    def _():
        acc_ref[...] = jnp.zeros_like(acc_ref)

    tile = _focal_elementwise(x_ref[...], t_ref[...],
                              a0=a0, a1=a1, gamma=gamma, logits=logits)
    if ragged:
        # Mask rows past the true end: the boundary block's out-of-bounds
        # sublanes hold garbage, and grid rounding may revisit the clamped
        # last block entirely (its unclamped row0 lands past rows_valid).
        blk = pl.program_id(0) * inner + i                       # unclamped block id
        row0 = blk * block_rows
        local = jax.lax.broadcasted_iota(jnp.int32, tile.shape, 0)
        tile = jnp.where(row0 + local < rows_valid, tile, 0.0)

    # Fold the sublane-group tree sum into every step (vreg-aligned reshape).
    acc_ref[...] += tile.reshape(-1, _SUBLANES, _LANES).sum(axis=0)

    @pl.when(i == pl.num_programs(1) - 1)
    def _():
        out_ref[...] = acc_ref[...][None, :, :]


def _focal_elem_kernel(x_ref, t_ref, out_ref, *, a0, a1, gamma, logits):
    out_ref[...] = _focal_elementwise(
        x_ref[...], t_ref[...], a0=a0, a1=a1, gamma=gamma, logits=logits
    ).astype(out_ref.dtype)


def focal_loss(inputs, targets, *, alpha=(0.5, 0.5), gamma=2,
               logits=True, reduce=True):
    """JAX/Pallas equivalent of FocalLoss.forward(inputs, {'target': targets})."""
    tgt = targets['target']
    orig_shape = inputs.shape
    n = inputs.size
    a0, a1 = float(alpha[0]), float(alpha[1])

    rows = pl.cdiv(n, _LANES)
    lane_pad = rows * _LANES - n                 # 0 whenever numel % 128 == 0

    x_flat = inputs.reshape(-1)
    t_flat = tgt.reshape(-1)
    if lane_pad:
        # TODO(synk): only hit when numel % 128 != 0; a manual tail DMA into a
        # neutral-prefilled VMEM scratch would remove this last pad copy too.
        x_pad_val = 100.0 if logits else 1.0     # neutral: focal loss is exactly 0
        x_flat = jnp.concatenate(
            [x_flat, jnp.full((lane_pad,), x_pad_val, dtype=x_flat.dtype)])
        t_flat = jnp.concatenate(
            [t_flat, jnp.ones((lane_pad,), dtype=t_flat.dtype)])
    # Free (bitcast) reshapes when lane_pad == 0; native dtypes, cast in-kernel.
    x2d = x_flat.reshape(rows, _LANES)
    t2d = t_flat.reshape(rows, _LANES)

    block_rows = min(_MAX_BLOCK_ROWS, _round_up(rows, _SUBLANES))
    total_blocks = pl.cdiv(rows, block_rows)
    in_bytes = (x2d.size * x2d.dtype.itemsize + t2d.size * t2d.dtype.itemsize)

    if reduce:
        # Leading "parallel" axis of 2 only where there are 2 TensorCores.
        nsplit = 2 if (_num_tensorcores() == 2 and total_blocks >= 2) else 1
        inner = pl.cdiv(total_blocks, nsplit)
        ragged = (nsplit * inner * block_rows) != rows
        # Clamp so grid-rounding never DMAs a fully out-of-range block; the
        # duplicate is masked out via the unclamped block id in the kernel.
        in_map = lambda c, i: (jnp.minimum(c * inner + i, total_blocks - 1), 0)
        kernel = functools.partial(
            _focal_sum_kernel, a0=a0, a1=a1, gamma=gamma, logits=logits,
            rows_valid=rows, block_rows=block_rows, inner=inner, ragged=ragged)
        partials = pl.pallas_call(
            kernel,
            out_shape=jax.ShapeDtypeStruct((nsplit, _SUBLANES, _LANES), jnp.float32),
            grid=(nsplit, inner),
            in_specs=[pl.BlockSpec((block_rows, _LANES), in_map),
                      pl.BlockSpec((block_rows, _LANES), in_map)],
            out_specs=pl.BlockSpec((1, _SUBLANES, _LANES), lambda c, i: (c, 0, 0)),
            scratch_shapes=[pltpu.VMEM((_SUBLANES, _LANES), jnp.float32)],
            compiler_params=pltpu.CompilerParams(
                dimension_semantics=("parallel", "arbitrary"),
                vmem_limit_bytes=_VMEM_LIMIT_BYTES),
            cost_estimate=pl.CostEstimate(
                flops=25 * n, transcendentals=2 * n,
                bytes_accessed=in_bytes + nsplit * _SUBLANES * _LANES * 4),
        )(x2d, t2d)
        return jnp.sum(partials) * (1.0 / n)

    out_dtype = (inputs.dtype if jnp.issubdtype(inputs.dtype, jnp.floating)
                 else jnp.float32)
    kernel = functools.partial(_focal_elem_kernel, a0=a0, a1=a1,
                               gamma=gamma, logits=logits)
    out = pl.pallas_call(
        kernel,
        out_shape=jax.ShapeDtypeStruct((rows, _LANES), out_dtype),
        grid=(total_blocks,),
        in_specs=[pl.BlockSpec((block_rows, _LANES), lambda i: (i, 0)),
                  pl.BlockSpec((block_rows, _LANES), lambda i: (i, 0))],
        out_specs=pl.BlockSpec((block_rows, _LANES), lambda i: (i, 0)),
        compiler_params=pltpu.CompilerParams(
            dimension_semantics=("parallel",),
            vmem_limit_bytes=_VMEM_LIMIT_BYTES),
        cost_estimate=pl.CostEstimate(
            flops=25 * n, transcendentals=2 * n,
            bytes_accessed=in_bytes + rows * _LANES * jnp.dtype(out_dtype).itemsize),
    )(x2d, t2d)
    out_flat = out.reshape(-1)
    if lane_pad:
        out_flat = out_flat[:n]
    return out_flat.reshape(orig_shape)


def _reference(inputs, tgt, alpha, gamma, logits, reduce):
    x = inputs.astype(jnp.float32)
    t_f = tgt.astype(jnp.float32)
    if logits:
        bce = jnp.maximum(x, 0.0) - x * t_f + jnp.log1p(jnp.exp(-jnp.abs(x)))
    else:
        bce = -(t_f * jnp.maximum(jnp.log(x), -100.0)
                + (1.0 - t_f) * jnp.maximum(jnp.log1p(-x), -100.0))
    p_t = jnp.exp(-bce)
    a = jnp.asarray(alpha, dtype=jnp.float32)[tgt.astype(jnp.int32)]
    f = a * (1.0 - p_t) ** gamma * bce
    return jnp.mean(f) if reduce else f


if __name__ == "__main__":
    key = jax.random.PRNGKey(0)
    k1, k2, k3, k4 = jax.random.split(key, 4)

    # Module __init__ defaults: alpha=(0.5, 0.5), gamma=2, logits=True, reduce=True.
    B, C, H, W = 2, 4, 16, 16                        # 2048 elements (128-aligned)
    inputs = jax.random.normal(k1, (B, C, H, W), dtype=jnp.float32)
    target = (jax.random.uniform(k2, (B, C, H, W)) > 0.5).astype(jnp.int32)
    targets = {'target': target}

    loss = jax.block_until_ready(focal_loss(inputs, targets))
    ref = _reference(inputs, target, (0.5, 0.5), 2, True, True)
    assert jnp.allclose(loss, ref, rtol=1e-5, atol=1e-6), (loss, ref)

    # unreduced path
    per_elem = jax.block_until_ready(focal_loss(inputs, targets, reduce=False))
    ref_elem = _reference(inputs, target, (0.5, 0.5), 2, True, False)
    assert jnp.allclose(per_elem, ref_elem, rtol=1e-5, atol=1e-6)

    # 128-aligned but row-ragged shape: zero-copy path + in-kernel row masking
    shp_r = (2, 4, 16, 20)                           # 2560 elems -> 20 rows
    x_r = jax.random.normal(k4, shp_r, dtype=jnp.float32)
    t_r = (jax.random.uniform(k3, shp_r) > 0.5).astype(jnp.int32)
    loss_r = jax.block_until_ready(focal_loss(x_r, {'target': t_r}))
    ref_r = _reference(x_r, t_r, (0.5, 0.5), 2, True, True)
    assert jnp.allclose(loss_r, ref_r, rtol=1e-5, atol=1e-6), (loss_r, ref_r)
    elem_r = jax.block_until_ready(focal_loss(x_r, {'target': t_r}, reduce=False))
    ref_er = _reference(x_r, t_r, (0.5, 0.5), 2, True, False)
    assert jnp.allclose(elem_r, ref_er, rtol=1e-5, atol=1e-6)

    # shape not a multiple of 128 (exercises the neutral lane-pad fallback)
    shp = (2, 3, 7, 5)                               # 210 elements
    x_odd = jax.random.normal(k3, shp, dtype=jnp.float32)
    t_odd = (jax.random.uniform(k1, shp) > 0.5).astype(jnp.int32)
    loss_odd = jax.block_until_ready(
        focal_loss(x_odd, {'target': t_odd}, alpha=(0.25, 0.75)))
    ref_odd = _reference(x_odd, t_odd, (0.25, 0.75), 2, True, True)
    assert jnp.allclose(loss_odd, ref_odd, rtol=1e-5, atol=1e-6), (loss_odd, ref_odd)

    # probabilities path (logits=False), including PyTorch's -100 log clamp
    probs = jax.nn.sigmoid(x_odd)
    loss_p = jax.block_until_ready(
        focal_loss(probs, {'target': t_odd}, logits=False, reduce=False))
    ref_p = _reference(probs, t_odd, (0.5, 0.5), 2, False, False)
    assert jnp.allclose(loss_p, ref_p, rtol=1e-5, atol=1e-5)

    print("KERNEL_OK")
</pallas_src>

<mosaic_0001>
module attributes {stable_mosaic.version = 11 : i64} {
  func.func @_focal_sum_kernel(%arg0: i32, %arg1: i32, %arg2: memref<16x128xf32, #tpu.memory_space<vmem>>, %arg3: memref<16x128xi32, #tpu.memory_space<vmem>>, %arg4: memref<1x8x128xf32, #tpu.memory_space<vmem>>, %arg5: memref<8x128xf32, #tpu.memory_space<vmem>>) attributes {dimension_semantics = [#tpu.dimension_semantics<parallel>, #tpu.dimension_semantics<arbitrary>], iteration_bounds = array<i64: 1, 1>, scalar_prefetch = 0 : i64, scratch_operands = 1 : i64, tpu.core_type = #tpu.core_type<tc>, window_params = [{transform_indices = @transform_0, window_bounds = array<i64: 16, 128>}, {transform_indices = @transform_1, window_bounds = array<i64: 16, 128>}, {transform_indices = @transform_2, window_bounds = array<i64: 1, 8, 128>}]} {
    %c0_i32 = arith.constant 0 : i32
    %0 = arith.cmpi eq, %arg1, %c0_i32 : i32
    %1 = arith.extui %0 : i1 to i32
    %c0_i32_0 = arith.constant 0 : i32
    %2 = arith.cmpi ne, %1, %c0_i32_0 : i32
    scf.if %2 {
      %cst_19 = arith.constant 0.000000e+00 : f32
      %43 = vector.broadcast %cst_19 : f32 to vector<8x128xf32>
      %c0_20 = arith.constant 0 : index
      %c0_21 = arith.constant 0 : index
      %44 = vector.load %arg5[%c0_20, %c0_21] : memref<8x128xf32, #tpu.memory_space<vmem>>, vector<8x128xf32>
      tpu.vector_store %arg5[%c0_20, %c0_21], %43 {strides = array<i32>} : memref<8x128xf32, #tpu.memory_space<vmem>>, vector<8x128xf32>,
    } else {
    }
    %c0 = arith.constant 0 : index
    %c0_1 = arith.constant 0 : index
    %3 = vector.load %arg2[%c0, %c0_1] : memref<16x128xf32, #tpu.memory_space<vmem>>, vector<16x128xf32>
    %c0_2 = arith.constant 0 : index
    %c0_3 = arith.constant 0 : index
    %4 = vector.load %arg3[%c0_2, %c0_3] : memref<16x128xi32, #tpu.memory_space<vmem>>, vector<16x128xi32>
    %5 = arith.sitofp %4 : vector<16x128xi32> to vector<16x128xf32>
    %c0_i32_4 = arith.constant 0 : i32
    %6 = vector.broadcast %c0_i32_4 : i32 to vector<16x128xi32>
    %7 = arith.cmpi ne, %4, %6 : vector<16x128xi32>
    %cst = arith.constant 0.000000e+00 : f32
    %8 = vector.broadcast %cst : f32 to vector<16x128xf32>
    %9 = arith.cmpf oge, %3, %8 : vector<16x128xf32>
    %10 = math.absf %3 : vector<16x128xf32>
    %cst_5 = arith.constant 0.000000e+00 : f32
    %11 = vector.broadcast %cst_5 : f32 to vector<16x128xf32>
    %12 = arith.subf %11, %10 : vector<16x128xf32>
    %13 = math.exp %12 : vector<16x128xf32>
    %cst_6 = arith.constant 0.000000e+00 : f32
    %14 = vector.broadcast %cst_6 : f32 to vector<16x128xf32>
    %15 = arith.select %9, %3, %14 : vector<16x128xi1>, vector<16x128xf32>
    %16 = arith.mulf %3, %5 : vector<16x128xf32>
    %17 = arith.subf %15, %16 : vector<16x128xf32>
    %18 = math.log1p %13 : vector<16x128xf32>
    %19 = arith.addf %17, %18 : vector<16x128xf32>
    %cst_7 = arith.constant 1.000000e+00 : f32
    %20 = vector.broadcast %cst_7 : f32 to vector<16x128xf32>
    %21 = arith.addf %20, %13 : vector<16x128xf32>
    %cst_8 = arith.constant 1.000000e+00 : f32
    %22 = vector.broadcast %cst_8 : f32 to vector<16x128xf32>
    %23 = arith.divf %22, %21 : vector<16x128xf32>
    %24 = arith.xori %9, %7 : vector<16x128xi1>
    %cst_9 = arith.constant 1.000000e+00 : f32
    %25 = vector.broadcast %cst_9 : f32 to vector<16x128xf32>
    %26 = arith.select %24, %25, %13 : vector<16x128xi1>, vector<16x128xf32>
    %27 = arith.mulf %26, %23 : vector<16x128xf32>
    %cst_10 = arith.constant 0.000000e+00 : f32
    %28 = vector.broadcast %cst_10 : f32 to vector<16x128xf32>
    %29 = arith.mulf %28, %5 : vector<16x128xf32>
    %cst_11 = arith.constant 5.000000e-01 : f32
    %30 = vector.broadcast %cst_11 : f32 to vector<16x128xf32>
    %31 = arith.addf %30, %29 : vector<16x128xf32>
    %32 = arith.mulf %27, %27 : vector<16x128xf32>
    %33 = arith.mulf %31, %32 : vector<16x128xf32>
    %34 = arith.mulf %33, %19 : vector<16x128xf32>
    %c0_12 = arith.constant 0 : index
    %c0_13 = arith.constant 0 : index
    %35 = vector.load %arg5[%c0_12, %c0_13] : memref<8x128xf32, #tpu.memory_space<vmem>>, vector<8x128xf32>
    %36 = vector.shape_cast %34 : vector<16x128xf32> to vector<2x8x128xf32>
    %cst_14 = arith.constant dense<0.000000e+00> : vector<8x128xf32>
    %37 = vector.multi_reduction <add>, %36, %cst_14 [0] : vector<2x8x128xf32> to vector<8x128xf32>
    %38 = arith.addf %35, %37 : vector<8x128xf32>
    %c0_15 = arith.constant 0 : index
    %c0_16 = arith.constant 0 : index
    %39 = vector.load %arg5[%c0_15, %c0_16] : memref<8x128xf32, #tpu.memory_space<vmem>>, vector<8x128xf32>
    tpu.vector_store %arg5[%c0_15, %c0_16], %38 {strides = array<i32>} : memref<8x128xf32, #tpu.memory_space<vmem>>, vector<8x128xf32>,
    %c0_i32_17 = arith.constant 0 : i32
    %40 = arith.cmpi eq, %arg1, %c0_i32_17 : i32
    %41 = arith.extui %40 : i1 to i32
    %c0_i32_18 = arith.constant 0 : i32
    %42 = arith.cmpi ne, %41, %c0_i32_18 : i32
    scf.if %42 {
      %c0_19 = arith.constant 0 : index
      %c0_20 = arith.constant 0 : index
      %43 = vector.load %arg5[%c0_19, %c0_20] : memref<8x128xf32, #tpu.memory_space<vmem>>, vector<8x128xf32>
      %44 = vector.shape_cast %43 : vector<8x128xf32> to vector<1x8x128xf32>
      %c0_21 = arith.constant 0 : index
      %c0_22 = arith.constant 0 : index
      %c0_23 = arith.constant 0 : index
      %45 = vector.load %arg4[%c0_21, %c0_22, %c0_23] : memref<1x8x128xf32, #tpu.memory_space<vmem>>, vector<1x8x128xf32>
      tpu.vector_store %arg4[%c0_21, %c0_22, %c0_23], %44 {strides = array<i32>} : memref<1x8x128xf32, #tpu.memory_space<vmem>>, vector<1x8x128xf32>,
    } else {
    }
    return
  }
  func.func @transform_0(%arg0: i32, %arg1: i32) -> (i32, i32) {
    %c1_i32 = arith.constant 1 : i32
    %0 = arith.muli %arg0, %c1_i32 : i32
    %1 = arith.addi %0, %arg1 : i32
    %c0_i32 = arith.constant 0 : i32
    %2 = arith.minsi %1, %c0_i32 : i32
    %c0_i32_0 = arith.constant 0 : i32
    %c0_i32_1 = arith.constant 0 : i32
    return %2, %c0_i32_0 : i32, i32
  }
  func.func @transform_1(%arg0: i32, %arg1: i32) -> (i32, i32) {
    %c1_i32 = arith.constant 1 : i32
    %0 = arith.muli %arg0, %c1_i32 : i32
    %1 = arith.addi %0, %arg1 : i32
    %c0_i32 = arith.constant 0 : i32
    %2 = arith.minsi %1, %c0_i32 : i32
    %c0_i32_0 = arith.constant 0 : i32
    %c0_i32_1 = arith.constant 0 : i32
    return %2, %c0_i32_0 : i32, i32
  }
  func.func @transform_2(%arg0: i32, %arg1: i32) -> (i32, i32, i32) {
    %c0_i32 = arith.constant 0 : i32
    %c0_i32_0 = arith.constant 0 : i32
    %c0_i32_1 = arith.constant 0 : i32
    return %arg0, %c0_i32, %c0_i32_0 : i32, i32, i32
  }
}

</mosaic_0001>

<bundles_post_ra>
// kernel: tpu_custom_call.1
= control target key start
LH: loop header
LB: loop body
LE: loop exit
PB: predicated region body
PF: predicated region fallthrough
CT: control target
= control target key end

     0   :  { %7 = vsyncpa [#allocation4], 0  ;;  %s323_s0 = inlined_call_operand.hbm [shape: f32[16,128], index: 0, kind: input, shape index: {}]   ;;  %s324_s1 = inlined_call_operand.hbm [shape: s32[16,128], index: 1, kind: input, shape index: {}]   ;;  %s325_s2 = inlined_call_operand.hbm [shape: f32[1,8,128], index: 2, kind: output, shape index: {}]  }
   0x1   :  { %8 = vsyncpa [#allocation7], 0 }
   0x2   :  { %9 = vsyncpa [#allocation5], 0  ;;  %s249_s9 = smov [#allocation3]   ;;  %s177_s13 = scalar_lea.hbm %s323_s0, 256 }
   0x3   :  { %s21_s10 = sshll.u32 %s249_s9, 4  ;;  %p178_p0 = scmp.ne.s32.totalorder %s323_s0, %s177_s13  ;;  %s22_s10 = int_to_ptr.vmem [resolvable:$true] %s21_s10 }
   0x4   :  { %p181_p1 = scmp.lt.u32.totalorder %s177_s13, %s323_s0 }
   0x6   :  { %p183_p2 = pnand %p181_p1, %p178_p0 }
   0x8   :  { %186 = shalt.err (!%p183_p2)
}
   0x9   :  { %s187_s18 = scalar_lea.vmem %s22_s10, 256  ;;  %p192_p4 = scmp.lt.s32.totalorder %s22_s10, %s22_s10 }
   0xa   :  { %p188_p3 = scmp.ne.s32.totalorder %s22_s10, %s187_s18  ;;  %p193_p5 = scmp.lt.s32.totalorder %s187_s18, %s187_s18 }
   0xc   :  { %p194_p6 = por %p193_p5, %p192_p4 }
   0xe   :  { %p195_p7 = pnand %p194_p6, %p188_p3 }
  0x10   :  { %198 = shalt.err (!%p195_p7)
}
  0x11   :  { %s250_s19 = smov 128   ;;  %s251_s20 = smov 8  }
  0x12   :  { %27 = dma.hbm_to_vmem [thread:$0]  %s323_s0, 256, %s22_s10, [#allocation4], %s250_s19, %s250_s19, %s251_s20  }
  0x13   :  { %s252_s23 = smov [#allocation6]   ;;  %s199_s27 = scalar_lea.hbm %s324_s1, 256 }
  0x14   :  { %s39_s24 = sshll.u32 %s252_s23, 4  ;;  %p200_p8 = scmp.ne.s32.totalorder %s324_s1, %s199_s27  ;;  %s40_s24 = int_to_ptr.vmem [resolvable:$true] %s39_s24 }
  0x15   :  { %p203_p9 = scmp.lt.u32.totalorder %s199_s27, %s324_s1 }
  0x17   :  { %p205_p10 = pnand %p203_p9, %p200_p8 }
  0x19   :  { %208 = shalt.err (!%p205_p10)
}
  0x1a   :  { %s209_s4 = scalar_lea.vmem %s40_s24, 256  ;;  %p214_p12 = scmp.lt.s32.totalorder %s40_s24, %s40_s24 }
  0x1b   :  { %p210_p11 = scmp.ne.s32.totalorder %s40_s24, %s209_s4  ;;  %p215_p13 = scmp.lt.s32.totalorder %s209_s4, %s209_s4 }
  0x1d   :  { %p216_p0 = por %p215_p13, %p214_p12 }
  0x1f   :  { %p217_p1 = pnand %p216_p0, %p210_p11 }
  0x21   :  { %220 = shalt.err (!%p217_p1)
}
  0x22   :  { %45 = dma.hbm_to_vmem [thread:$0]  %s324_s1, 256, %s40_s24, [#allocation7], %s250_s19, %s250_s19, %s251_s20  }
  0x23   :  { %243 = dma.done.wait [#allocation4], 256  }
  0x24   :  { %244 = vsyncadd [#allocation4], 4294967040 }
  0x25   :  { %245 = dma.done.wait [#allocation7], 256  }
  0x26   :  { %246 = vsyncadd [#allocation7], 4294967040  ;;  %v65_v0 = vld [vmem:[#allocation3] sm:$0xff]  ;;  %v66_v1 = vld [vmem:[#allocation3 + $0x8] sm:$0xff]  ;;  %s253_s1 = smov [#allocation8]  }
  0x27   :  { %v75_v2 = vand.u32 2147483647, %v65_v0  ;;  %v76_v3 = vand.u32 2147483647, %v66_v1  ;;  %v67_v12 = vld [vmem:[#allocation6] sm:$0xff]  ;;  %v68_v13 = vld [vmem:[#allocation6 + $0x8] sm:$0xff] }
  0x28   :  { %v69_v16 = vcvt.s32.f32 %v67_v12  ;;  %v70_v17 = vcvt.s32.f32 %v68_v13  ;;  %vm71_vm0 = vcmp.ne.s32.totalorder %v67_v12, 0  ;;  %vm73_vm1 = vcmp.ge.f32.partialorder %v65_v0, 0.0  ;;  %s146_s6 = sshll.u32 %s253_s1, 4  ;;  %s147_s6 = int_to_ptr.vmem [resolvable:$true] %s146_s6 }
  0x29   :  { %v77_v4 = vsub.f32 0.0, %v75_v2  ;;  %v78_v5 = vsub.f32 0.0, %v76_v3  ;;  %vm72_vm2 = vcmp.ne.s32.totalorder %v68_v13, 0  ;;  %vm74_vm3 = vcmp.ge.f32.partialorder %v66_v1, 0.0  ;;  %vm293_vm4 = vmxor %vm73_vm1, %vm71_vm0  ;;  %s221_s7 = scalar_lea.vmem %s147_s6, 128  ;;  %p226_p3 = scmp.lt.s32.totalorder %s147_s6, %s147_s6 }
  0x2a   :  { %v85_v21 = vmul.f32 %v69_v16, %v65_v0  ;;  %v83_v24 = vsel %vm73_vm1, %v65_v0, 0.0  ;;  %v86_v25 = vmul.f32 %v70_v17, %v66_v1  ;;  %vm297_vm5 = vmxor %vm74_vm3, %vm72_vm2  ;;  %v84_v27 = vsel %vm74_vm3, %v66_v1, 0.0  ;;  %p222_p2 = scmp.ne.s32.totalorder %s147_s6, %s221_s7  ;;  %p227_p4 = scmp.lt.s32.totalorder %s221_s7, %s221_s7 }
  0x2b   :  { %v79_v6 = vmul.f32 1.442695, %v77_v4  ;;  %v81_v7 = vmul.f32 1.442695, %v78_v5  ;;  %v121_v29 = vmul.f32 0.0, %v69_v16  ;;  %v122_v34 = vmul.f32 0.0, %v70_v17 }
  0x2c   :  { %v87_v36 = vsub.f32 %v83_v24, %v85_v21  ;;  %v88_v40 = vsub.f32 %v84_v27, %v86_v25  ;;  %p228_p5 = por %p227_p4, %p226_p3 }
  0x2d   :  { %165 = vpow2.f32 %v79_v6  ;;  %v123_v45 = vadd.f32 0.5, %v121_v29  ;;  %v124_v48 = vadd.f32 0.5, %v122_v34 }
  0x2e   :  { %167 = vpow2.f32 %v81_v7  ;;  %p229_p6 = pnand %p228_p5, %p222_p2 }
  0x37   :  { %v166_v8 = vpop.eup %165 }
  0x38   :  { %v168_v9 = vpop.eup %167  ;;  %v89_v10 = vadd.f32 1.0, %v166_v8  ;;  %v92_v14 = vmul.f32 -0.5, %v166_v8  ;;  %v95_v19 = vand.u32 2147483647, %v166_v8  ;;  %v117_v33 = vsel %vm293_vm4, 1.0, %v166_v8 }
  0x39   :  { %v98_v11 = vadd.f32 1.0, %v168_v9  ;;  %v101_v15 = vmul.f32 -0.5, %v168_v9  ;;  %v104_v22 = vand.u32 2147483647, %v168_v9  ;;  %v118_v38 = vsel %vm297_vm5, 1.0, %v168_v9 }
  0x3a   :  { %169 = vlog2.f32 %v89_v10  ;;  %v93_v18 = vadd.f32 1.0, %v92_v14  ;;  %vm301_vm6 = vcmp.lt.f32.partialorder %v95_v19, 0.0004427343 }
  0x3b   :  { %171 = vlog2.f32 %v98_v11  ;;  %v102_v20 = vadd.f32 1.0, %v101_v15  ;;  %vm105_vm7 = vcmp.lt.f32.partialorder %v104_v22, 0.0004427343 }
  0x3c   :  { %173 = vrcp.f32 %v89_v10  ;;  %v94_v28 = vmul.f32 %v166_v8, %v93_v18 }
  0x3d   :  { %175 = vrcp.f32 %v98_v11  ;;  %v103_v32 = vmul.f32 %v168_v9, %v102_v20 }
  0x44   :  { %v170_v30 = vpop.eup %169 }
  0x45   :  { %v172_v35 = vpop.eup %171  ;;  %v91_v37 = vmul.f32 0.6931472, %v170_v30 }
  0x46   :  { %v174_v39 = vpop.eup %173  ;;  %v100_v41 = vmul.f32 0.6931472, %v172_v35 }
  0x47   :  { %v176_v42 = vpop.eup %175  ;;  %v97_v43 = vsel %vm301_vm6, %v94_v28, %v91_v37  ;;  %v119_v44 = vmul.f32 %v174_v39, %v117_v33 }
  0x48   :  { %v106_v46 = vsel %vm105_vm7, %v103_v32, %v100_v41  ;;  %v120_v47 = vmul.f32 %v176_v42, %v118_v38  ;;  %v107_v49 = vadd.f32 %v97_v43, %v87_v36 }
  0x49   :  { %v125_v50 = vmul.f32 %v119_v44, %v119_v44  ;;  %v108_v51 = vadd.f32 %v106_v46, %v88_v40 }
  0x4a   :  { %v126_v52 = vmul.f32 %v120_v47, %v120_v47 }
  0x4b   :  { %v127_v53 = vmul.f32 %v125_v50, %v123_v45 }
  0x4c   :  { %v128_v54 = vmul.f32 %v126_v52, %v124_v48 }
  0x4d   :  { %v129_v55 = vmul.f32 %v127_v53, %v107_v49 }
  0x4e   :  { %v130_v56 = vmul.f32 %v128_v54, %v108_v51 }
  0x50   :  { %v132_v57 = vadd.f32 %v130_v56, %v129_v55 }
  0x52   :  { %139 = vst [vmem:[#allocation8] sm:$0xff] %v132_v57 }
  0x53   :  { %232 = shalt.err (!%p229_p6)
}
  0x54   :  { %s233_s10 = scalar_lea.hbm %s325_s2, 128 }
  0x55   :  { %p234_p7 = scmp.ne.s32.totalorder %s325_s2, %s233_s10  ;;  %p237_p8 = scmp.lt.u32.totalorder %s233_s10, %s325_s2 }
  0x57   :  { %p239_p9 = pnand %p237_p8, %p234_p7 }
  0x59   :  { %242 = shalt.err (!%p239_p9)
}
  0x5a   :  { %149 = dma.vmem_to_hbm [thread:$0]  %s147_s6, 128, %s325_s2, [#allocation5]  }
  0x5b   :  { %247 = dma.done.wait [#allocation5], 128  }
  0x5c   :  { %248 = vsyncadd [#allocation5], 4294967168 }
  0x5d   :  { %153 = vsyncpa [#allocation4], 1 }
  0x5e   :  { %154 = vsyncpa [#allocation7], 1 }
  0x5f   :  { %155 = vsyncpa [#allocation5], 1 }

</bundles_post_ra>
